<compile_context>
chip_gen: v5e
topology: v5e:2x2
jax: 0.10.0
libtpu: 0.0.40
codegen_flags: <defaults>
</compile_context>

<pallas_src>
import jax
import jax.numpy as jnp
from jax.experimental import pallas as pl
from jax.experimental.pallas import tpu as pltpu


def _mean_max_kernel(h_ref, m_ref, o_ref):
    # h_ref: (TB, S, H)   m_ref: (TB, S)   o_ref: (TB, 2H)
    h = h_ref[...].astype(jnp.float32)                   # (TB, S, H)
    m = m_ref[...].astype(jnp.float32)                   # (TB, S)
    tb, s = m.shape
    m3 = m.reshape(tb, s, 1)                             # (TB, S, 1) broadcast helper

    # masked mean pooling over the token axis
    sum_emb = jnp.sum(h * m3, axis=1)                                    # (TB, H)
    sum_mask = jnp.maximum(jnp.sum(m, axis=1, keepdims=True), 1e-9)      # (TB, 1)
    mean_emb = sum_emb / sum_mask                                        # (TB, H)

    # masked max pooling (mask == 0 -> exactly -1e9, matching PyTorch)
    masked = jnp.where(m3 == 0.0, -1.0e9, h)                             # (TB, S, H)
    max_emb = jnp.max(masked, axis=1)                                    # (TB, H)

    hdim = h_ref.shape[-1]
    o_ref[:, 0:hdim] = mean_emb.astype(o_ref.dtype)
    o_ref[:, hdim:2 * hdim] = max_emb.astype(o_ref.dtype)


def mean_max_pooling(last_hidden_state, attention_mask, *, block_b=8):
    """last_hidden_state: (B, S, H);  attention_mask: (B, S)  ->  (B, 2H)."""
    B, S, H = last_hidden_state.shape
    mask = attention_mask.astype(jnp.float32)

    # Pad batch to a multiple of block_b so every grid step sees an
    # 8-sublane-aligned tile and emits a full (TB, 2H) output slab.
    pad = (-B) % block_b
    if pad:
        last_hidden_state = jnp.pad(last_hidden_state, ((0, pad), (0, 0), (0, 0)))
        mask = jnp.pad(mask, ((0, pad), (0, 0)))
    Bp = B + pad

    out = pl.pallas_call(
        _mean_max_kernel,
        out_shape=jax.ShapeDtypeStruct((Bp, 2 * H), last_hidden_state.dtype),
        grid=(Bp // block_b,),
        in_specs=[
            pl.BlockSpec((block_b, S, H), lambda b: (b, 0, 0)),
            pl.BlockSpec((block_b, S), lambda b: (b, 0)),
        ],
        out_specs=pl.BlockSpec((block_b, 2 * H), lambda b: (b, 0)),
        compiler_params=pltpu.CompilerParams(
            dimension_semantics=("parallel",),
        ),
    )(last_hidden_state, mask)
    return out[:B]


def _reference(last_hidden_state, attention_mask):
    m = attention_mask.astype(jnp.float32)[..., None]                    # (B, S, 1)
    sum_emb = jnp.sum(last_hidden_state * m, axis=1)
    sum_mask = jnp.maximum(jnp.sum(m, axis=1), 1e-9)
    mean_emb = sum_emb / sum_mask
    masked = jnp.where(m == 0.0, -1.0e9, last_hidden_state)
    max_emb = jnp.max(masked, axis=1)
    return jnp.concatenate([mean_emb, max_emb], axis=-1)


if __name__ == "__main__":
    key = jax.random.PRNGKey(0)
    B, S, H = 2, 8, 32  # batch, seq, hidden (small test shapes)

    k_h, _ = jax.random.split(key)
    last_hidden_state = jax.random.normal(k_h, (B, S, H), dtype=jnp.float32)

    # deterministic attention mask with some padding on the 2nd example
    lengths = jnp.array([S, 5], dtype=jnp.int32)
    attention_mask = (jnp.arange(S)[None, :] < lengths[:, None]).astype(jnp.int32)

    out = mean_max_pooling(last_hidden_state, attention_mask)
    out = jax.block_until_ready(out)

    ref = _reference(last_hidden_state, attention_mask)
    assert out.shape == (B, 2 * H)
    assert jnp.allclose(out, ref, atol=1e-5, rtol=1e-5)

    print("KERNEL_OK")
</pallas_src>

<mosaic_0001>
module attributes {stable_mosaic.version = 11 : i64} {
  func.func @_mean_max_kernel(%arg0: i32, %arg1: memref<8x8x32xf32, #tpu.memory_space<vmem>>, %arg2: memref<8x8xf32, #tpu.memory_space<vmem>>, %arg3: memref<8x64xf32, #tpu.memory_space<vmem>>) attributes {dimension_semantics = [#tpu.dimension_semantics<parallel>], iteration_bounds = array<i64: 1>, scalar_prefetch = 0 : i64, scratch_operands = 0 : i64, tpu.core_type = #tpu.core_type<tc>, window_params = [{transform_indices = @transform_0, window_bounds = array<i64: 8, 8, 32>}, {transform_indices = @transform_1, window_bounds = array<i64: 8, 8>}, {transform_indices = @transform_2, window_bounds = array<i64: 8, 64>}]} {
    %c0 = arith.constant 0 : index
    %c0_0 = arith.constant 0 : index
    %c0_1 = arith.constant 0 : index
    %0 = vector.load %arg1[%c0, %c0_0, %c0_1] : memref<8x8x32xf32, #tpu.memory_space<vmem>>, vector<8x8x32xf32>
    %c0_2 = arith.constant 0 : index
    %c0_3 = arith.constant 0 : index
    %1 = vector.load %arg2[%c0_2, %c0_3] : memref<8x8xf32, #tpu.memory_space<vmem>>, vector<8x8xf32>
    %2 = vector.shape_cast %1 : vector<8x8xf32> to vector<8x8x1xf32>
    %3 = vector.broadcast %2 : vector<8x8x1xf32> to vector<8x8x32xf32>
    %4 = arith.mulf %0, %3 : vector<8x8x32xf32>
    %cst = arith.constant dense<0.000000e+00> : vector<8x32xf32>
    %5 = vector.multi_reduction <add>, %4, %cst [1] : vector<8x8x32xf32> to vector<8x32xf32>
    %cst_4 = arith.constant dense<0.000000e+00> : vector<8xf32>
    %6 = vector.multi_reduction <add>, %1, %cst_4 [1] : vector<8x8xf32> to vector<8xf32>
    %7 = vector.shape_cast %6 : vector<8xf32> to vector<8x1xf32>
    %cst_5 = arith.constant 9.99999971E-10 : f32
    %8 = vector.broadcast %cst_5 : f32 to vector<8x1xf32>
    %9 = arith.maximumf %7, %8 : vector<8x1xf32>
    %10 = vector.broadcast %9 : vector<8x1xf32> to vector<8x32xf32>
    %11 = arith.divf %5, %10 : vector<8x32xf32>
    %cst_6 = arith.constant 0.000000e+00 : f32
    %12 = vector.broadcast %cst_6 : f32 to vector<8x8x1xf32>
    %13 = arith.cmpf oeq, %2, %12 : vector<8x8x1xf32>
    %cst_7 = arith.constant -1.000000e+09 : f32
    %14 = vector.shape_cast %13 : vector<8x8x1xi1> to vector<8x8x1xi1>
    %15 = vector.broadcast %14 : vector<8x8x1xi1> to vector<8x8x32xi1>
    %16 = vector.broadcast %cst_7 : f32 to vector<8x8x32xf32>
    %17 = arith.select %15, %16, %0 : vector<8x8x32xi1>, vector<8x8x32xf32>
    %cst_8 = arith.constant dense<0xFF800000> : vector<8x32xf32>
    %18 = vector.multi_reduction <maximumf>, %17, %cst_8 [1] : vector<8x8x32xf32> to vector<8x32xf32>
    %c0_9 = arith.constant 0 : index
    %c0_10 = arith.constant 0 : index
    %19 = vector.load %arg3[%c0_9, %c0_10] : memref<8x64xf32, #tpu.memory_space<vmem>>, vector<8x32xf32>
    tpu.vector_store %arg3[%c0_9, %c0_10], %11 {strides = array<i32>} : memref<8x64xf32, #tpu.memory_space<vmem>>, vector<8x32xf32>,
    %c0_11 = arith.constant 0 : index
    %c32 = arith.constant 32 : index
    %20 = vector.load %arg3[%c0_11, %c32] : memref<8x64xf32, #tpu.memory_space<vmem>>, vector<8x32xf32>
    tpu.vector_store %arg3[%c0_11, %c32], %18 {strides = array<i32>} : memref<8x64xf32, #tpu.memory_space<vmem>>, vector<8x32xf32>,
    return
  }
  func.func @transform_0(%arg0: i32) -> (i32, i32, i32) {
    %c0_i32 = arith.constant 0 : i32
    %c0_i32_0 = arith.constant 0 : i32
    %c0_i32_1 = arith.constant 0 : i32
    return %arg0, %c0_i32, %c0_i32_0 : i32, i32, i32
  }
  func.func @transform_1(%arg0: i32) -> (i32, i32) {
    %c0_i32 = arith.constant 0 : i32
    %c0_i32_0 = arith.constant 0 : i32
    return %arg0, %c0_i32 : i32, i32
  }
  func.func @transform_2(%arg0: i32) -> (i32, i32) {
    %c0_i32 = arith.constant 0 : i32
    %c0_i32_0 = arith.constant 0 : i32
    return %arg0, %c0_i32 : i32, i32
  }
}

</mosaic_0001>

<bundles_post_ra>
// kernel: tpu_custom_call.1
= control target key start
LH: loop header
LB: loop body
LE: loop exit
PB: predicated region body
PF: predicated region fallthrough
CT: control target
= control target key end

     0   :  { %7 = vsyncpa [#allocation3], 0  ;;  %s860_s0 = inlined_call_operand.hbm [shape: f32[8,8,32], index: 0, kind: input, shape index: {}]   ;;  %s861_s1 = inlined_call_operand.hbm [shape: f32[8,8], index: 1, kind: input, shape index: {}]   ;;  %s862_s2 = inlined_call_operand.hbm [shape: f32[8,64], index: 2, kind: output, shape index: {}]  }
   0x1   :  { %8 = vsyncpa [#allocation6], 0 }
   0x2   :  { %9 = vsyncpa [#allocation4], 0  ;;  %s14_s11 = sshll.u32 %s860_s0, 4  ;;  %s573_s12 = smov [#allocation2]   ;;  %s15_s11 = int_to_ptr.hbm [resolvable:$true] %s14_s11 }
   0x3   :  { %s16_s13 = sshll.u32 %s573_s12, 4  ;;  %s28_s16 = sshll.u32 %s861_s1, 4  ;;  %s17_s13 = int_to_ptr.vmem [resolvable:$true] %s16_s13  ;;  %s29_s16 = int_to_ptr.hbm [resolvable:$true] %s28_s16 }
   0x4   :  { %s574_s17 = smov 128   ;;  %s575_s18 = smov 8  }
   0x5   :  { %22 = dma.hbm_to_vmem [thread:$0]  %s15_s11, 1024, %s17_s13, [#allocation3], %s574_s17, %s574_s17, %s575_s18  }
   0x6   :  { %s576_s19 = smov [#allocation5]  }
   0x7   :  { %s30_s20 = sshll.u32 %s576_s19, 4  ;;  %s31_s20 = int_to_ptr.vmem [resolvable:$true] %s30_s20 }
   0x8   :  { %33 = dma.hbm_to_vmem [thread:$0]  %s29_s16, 128, %s31_s20, [#allocation6]  }
   0x9   :  { %567 = dma.done.wait [#allocation3], 1024  }
   0xa   :  { %568 = vsyncadd [#allocation3], 4294966272 }
   0xb   :  { %569 = dma.done.wait [#allocation6], 128  }
   0xc   :  { %570 = vsyncadd [#allocation6], 4294967168  ;;  %v52_v0 = vlaneseq  ;;  %v50_v2 = vld [vmem:[#allocation5] sm:$0xff]  ;;  %vm172_vm0 = vcmask 64512   ;;  %v602_v13 = vld [vmem:[#allocation2 + $0x10] sm:$0xff]  ;;  %vm863_vm2 = vcmask 261120  }
   0xd   :  { %v79_v3 = vperm.slane %v50_v2, 4  ;;  %v65_v4 = vperm.slane %v50_v2, 2  ;;  %v51_v5 = vperm.slane %v50_v2, 0  ;;  %v86_v6 = vperm.slane %v50_v2, 5  ;;  %v46_v14 = vld [vmem:[#allocation2 + $0x20] sm:$0xff]  ;;  %v47_v24 = vld [vmem:[#allocation2 + $0x28] sm:$0xff] }
   0xe   :  { %v53_v1 = vshrl.u32 %v52_v0, 7  ;;  %v72_v7 = vperm.slane %v50_v2, 3  ;;  %v58_v8 = vperm.slane %v50_v2, 1  ;;  %v100_v9 = vperm.slane %v50_v2, 7  ;;  %v607_v16 = vld [vmem:[#allocation2] sm:$0xff]  ;;  %v618_v27 = vld [vmem:[#allocation2 + $0x18] sm:$0xff] }
   0xf   :  { %v93_v10 = vperm.slane %v50_v2, 6  ;;  %v173_v11 = vsel %vm172_vm0, %v50_v2, 0.0  ;;  %v43_v39 = vld [vmem:[#allocation2 + $0x8] sm:$0xff]  ;;  %v623_v45 = vld [vmem:[#allocation2 + $0x38] sm:$0xff]  ;;  %v633_v60 = vld [vmem:[#allocation2 + $0x30] sm:$0xff]  ;;  %vm410_vm10 = vcmask 1041409  }
  0x10   :  { %478 = vset.pattern.permute.xlu2 %v53_v1  ;;  %477 = vset.pattern.permute.xlu1 %v53_v1  ;;  %vm413_vm11 = vcmask 1042434   ;;  %vm868_vm12 = vcmask 1043459   ;;  %vm867_vm13 = vcmask 1044484   ;;  %vm866_vm14 = vcmask 1045509   ;;  %s577_s0 = smov 32   ;;  %s578_s1 = smov [#allocation7]  }
  0x11   :  { %476 = vset.pattern.permute.xlu0 %v53_v1  ;;  %vm865_vm15 = vcmask 1046534   ;;  %vm864_vm0 = vcmask 1047559   ;;  %s457_s21 = sshll.u32 %s578_s1, 4  ;;  %s459_s24 = sshll.u32 %s862_s2, 4  ;;  %s458_s21 = int_to_ptr.vmem [resolvable:$true] %s457_s21  ;;  %s460_s24 = int_to_ptr.hbm [resolvable:$true] %s459_s24 }
  0x18   :  { %84 = vperm.xlu2 %478, %v79_v3   ;;  %70 = vperm.xlu1 %477, %v65_v4  }
  0x19   :  { %56 = vperm.xlu0 %476, %v51_v5  }
  0x20   :  { %91 = vperm.xlu2 %478, %v86_v6   ;;  %77 = vperm.xlu1 %477, %v72_v7  }
  0x21   :  { %63 = vperm.xlu0 %476, %v58_v8  }
  0x28   :  { %105 = vperm.xlu1 %477, %v100_v9  }
  0x29   :  { %98 = vperm.xlu0 %476, %v93_v10  }
  0x49   :  { %174 = vadd.xlane.f32.xlu2 %v173_v11 }
  0x72   :  { %v600_v12 = vpop.permute.xlu2 %84 }
  0x73   :  { %vm317_vm1 = vcmp.eq.f32.partialorder %v600_v12, 0.0  ;;  %v111_v2 = vmul.f32 %v600_v12, %v46_v14 }
  0x74   :  { %v341_v20 = vsel %vm317_vm1, -1e+09, %v46_v14 }
  0x75   :  { %v373_v25 = vsel %vm863_vm2, %v341_v20, -inf }
  0x76   :  { %v374_v31 = vrot.slane %v373_v25, 4 }
  0x78   :  { %v375_v40 = vmax.f32 %v373_v25, %v374_v31 }
  0x7a   :  { %v92_v19 = vpop.permute.xlu2 %91  ;;  %v376_v49 = vrot.slane %v375_v40, 2 }
  0x7b   :  { %vm318_vm5 = vcmp.eq.f32.partialorder %v92_v19, 0.0  ;;  %v112_v7 = vmul.f32 %v92_v19, %v47_v24 }
  0x7c   :  { %v342_v29 = vsel %vm318_vm5, -1e+09, %v47_v24  ;;  %v377_v61 = vmax.f32 %v375_v40, %v376_v49 }
  0x7d   :  { %v380_v35 = vsel %vm863_vm2, %v342_v29, -inf }
  0x7e   :  { %v381_v41 = vrot.slane %v380_v35, 4  ;;  %v378_v10 = vrot.slane %v377_v61, 1 }
  0x80   :  { %v382_v52 = vmax.f32 %v380_v35, %v381_v41 }
  0x82   :  { %v383_v0 = vrot.slane %v382_v52, 2 }
  0x8a   :  { %v605_v15 = vpop.permute.xlu1 %70 }
  0x8b   :  { %vm315_vm3 = vcmp.eq.f32.partialorder %v605_v15, 0.0  ;;  %v610_v17 = vpop.permute.xlu0 %56  ;;  %v109_v12 = vmul.f32 %v605_v15, %v602_v13  ;;  %v379_v15 = vmax.f32 %v377_v61, %v378_v10 }
  0x8c   :  { %v339_v18 = vsel %vm315_vm3, -1e+09, %v602_v13  ;;  %vm313_vm4 = vcmp.eq.f32.partialorder %v610_v17, 0.0  ;;  %v107_v19 = vmul.f32 %v610_v17, %v607_v16 }
  0x8d   :  { %v337_v21 = vsel %vm313_vm4, -1e+09, %v607_v16  ;;  %v359_v23 = vsel %vm863_vm2, %v339_v18, -inf  ;;  %v144_v16 = vsel %vm863_vm2, %v111_v2, 0.0 }
  0x8e   :  { %v345_v22 = vsel %vm863_vm2, %v337_v21, -inf  ;;  %v360_v28 = vrot.slane %v359_v23, 4  ;;  %v384_v21 = vmax.f32 %v382_v52, %v383_v0  ;;  %v116_v17 = vsel %vm863_vm2, %v107_v19, 0.0 }
  0x8f   :  { %v346_v26 = vrot.slane %v345_v22, 4 }
  0x90   :  { %v361_v37 = vmax.f32 %v359_v23, %v360_v28 }
  0x91   :  { %v347_v34 = vmax.f32 %v345_v22, %v346_v26 }
  0x92   :  { %v78_v30 = vpop.permute.xlu1 %77  ;;  %v362_v46 = vrot.slane %v361_v37, 2 }
  0x93   :  { %vm316_vm6 = vcmp.eq.f32.partialorder %v78_v30, 0.0  ;;  %v64_v32 = vpop.permute.xlu0 %63  ;;  %v348_v43 = vrot.slane %v347_v34, 2  ;;  %v110_v24 = vmul.f32 %v78_v30, %v618_v27 }
  0x94   :  { %v340_v33 = vsel %vm316_vm6, -1e+09, %v618_v27  ;;  %vm314_vm7 = vcmp.eq.f32.partialorder %v64_v32, 0.0  ;;  %v363_v58 = vmax.f32 %v361_v37, %v362_v46  ;;  %v108_v29 = vmul.f32 %v64_v32, %v43_v39 }
  0x95   :  { %v366_v36 = vsel %vm863_vm2, %v340_v33, -inf  ;;  %v338_v44 = vsel %vm314_vm7, -1e+09, %v43_v39  ;;  %v349_v55 = vmax.f32 %v347_v34, %v348_v43  ;;  %v385_v34 = vrot.slane %v384_v21, 1 }
  0x96   :  { %v367_v38 = vrot.slane %v366_v36, 4  ;;  %v352_v47 = vsel %vm863_vm2, %v338_v44, -inf  ;;  %v364_v6 = vrot.slane %v363_v58, 1  ;;  %v151_v27 = vsel %vm863_vm2, %v112_v7, 0.0 }
  0x97   :  { %v353_v51 = vrot.slane %v352_v47, 4  ;;  %v350_v3 = vrot.slane %v349_v55, 1  ;;  %v137_v30 = vsel %vm863_vm2, %v110_v24, 0.0  ;;  %v123_v32 = vsel %vm863_vm2, %v108_v29, 0.0 }
  0x98   :  { %v368_v42 = vmax.f32 %v366_v36, %v367_v38  ;;  %v365_v26 = vmax.f32 %v363_v58, %v364_v6  ;;  %v130_v36 = vsel %vm863_vm2, %v109_v12, 0.0  ;;  %v117_v44 = vrot.slane %v116_v17, 4 }
  0x99   :  { %v354_v56 = vmax.f32 %v352_v47, %v353_v51  ;;  %v351_v14 = vmax.f32 %v349_v55, %v350_v3  ;;  %v131_v41 = vrot.slane %v130_v36, 4  ;;  %v138_v46 = vrot.slane %v137_v30, 4 }
  0x9a   :  { %v626_v48 = vpop.permute.xlu1 %105  ;;  %v369_v50 = vrot.slane %v368_v42, 2  ;;  %v124_v49 = vrot.slane %v123_v32, 4  ;;  %v145_v51 = vrot.slane %v144_v16, 4  ;;  %v152_v55 = vrot.slane %v151_v27, 4 }
  0x9b   :  { %vm320_vm8 = vcmp.eq.f32.partialorder %v626_v48, 0.0  ;;  %v630_v54 = vpop.permute.xlu0 %98  ;;  %v355_v63 = vrot.slane %v354_v56, 2  ;;  %v118_v58 = vadd.f32 %v117_v44, %v116_v17 }
  0x9c   :  { %v344_v53 = vsel %vm320_vm8, -1e+09, %v623_v45  ;;  %v370_v62 = vmax.f32 %v368_v42, %v369_v50  ;;  %vm319_vm9 = vcmp.eq.f32.partialorder %v630_v54, 0.0  ;;  %v386_v42 = vmax.f32 %v384_v21, %v385_v34 }
  0x9d   :  { %v394_v57 = vsel %vm863_vm2, %v344_v53, -inf  ;;  %v356_v4 = vmax.f32 %v354_v56, %v355_v63  ;;  %v343_v5 = vsel %vm319_vm9, -1e+09, %v633_v60  ;;  %v132_v53 = vadd.f32 %v131_v41, %v130_v36 }
  0x9e   :  { %v395_v59 = vrot.slane %v394_v57, 4  ;;  %v387_v9 = vsel %vm863_vm2, %v343_v5, -inf  ;;  %v371_v11 = vrot.slane %v370_v62, 1  ;;  %v113_v56 = vmul.f32 %v630_v54, %v633_v60 }
  0x9f   :  { %v357_v18 = vrot.slane %v356_v4, 1  ;;  %v388_v20 = vrot.slane %v387_v9, 4  ;;  %v125_v61 = vadd.f32 %v124_v49, %v123_v32  ;;  %v146_v63 = vadd.f32 %v145_v51, %v144_v16 }
  0xa0   :  { %v396_v1 = vmax.f32 %v394_v57, %v395_v59  ;;  %v372_v28 = vmax.f32 %v370_v62, %v371_v11  ;;  %v139_v59 = vadd.f32 %v138_v46, %v137_v30  ;;  %v114_v62 = vmul.f32 %v626_v48, %v623_v45 }
  0xa1   :  { %v358_v23 = vmax.f32 %v356_v4, %v357_v18  ;;  %v389_v25 = vmax.f32 %v387_v9, %v388_v20  ;;  %v133_v0 = vrot.slane %v132_v53, 2  ;;  %v158_v2 = vsel %vm863_vm2, %v113_v56, 0.0 }
  0xa2   :  { %v397_v8 = vrot.slane %v396_v1, 2  ;;  %v119_v3 = vrot.slane %v118_v58, 2  ;;  %v140_v4 = vrot.slane %v139_v59, 2  ;;  %v126_v5 = vrot.slane %v125_v61, 2 }
  0xa3   :  { %v440_v31 = vsel %vm410_vm10, %v358_v23, %v351_v14  ;;  %v390_v33 = vrot.slane %v389_v25, 2  ;;  %v165_v54 = vsel %vm863_vm2, %v114_v62, 0.0  ;;  %v159_v60 = vrot.slane %v158_v2, 4 }
  0xa4   :  { %v398_v22 = vmax.f32 %v396_v1, %v397_v8  ;;  %v441_v13 = vsel %vm413_vm11, %v365_v26, %v440_v31  ;;  %v153_v1 = vadd.f32 %v152_v55, %v151_v27  ;;  %v147_v6 = vrot.slane %v146_v63, 2 }
  0xa5   :  { %v391_v37 = vmax.f32 %v389_v25, %v390_v33  ;;  %v442_v38 = vsel %vm868_vm12, %v372_v28, %v441_v13  ;;  %v134_v7 = vadd.f32 %v133_v0, %v132_v53  ;;  %v120_v9 = vadd.f32 %v119_v3, %v118_v58 }
  0xa6   :  { %v399_v35 = vrot.slane %v398_v22, 1  ;;  %v443_v40 = vsel %vm867_vm13, %v379_v15, %v442_v38  ;;  %v154_v8 = vrot.slane %v153_v1, 2  ;;  %v141_v10 = vadd.f32 %v140_v4, %v139_v59 }
  0xa7   :  { %v392_v39 = vrot.slane %v391_v37, 1  ;;  %v444_v50 = vsel %vm866_vm14, %v386_v42, %v443_v40  ;;  %v166_v11 = vrot.slane %v165_v54, 4  ;;  %v127_v18 = vadd.f32 %v126_v5, %v125_v61 }
  0xa8   :  { %v400_v43 = vmax.f32 %v398_v22, %v399_v35  ;;  %v160_v20 = vadd.f32 %v159_v60, %v158_v2  ;;  %v663_v45 = vadd.f32 %v147_v6, %v146_v63  ;;  %v135_v48 = vrot.slane %v134_v7, 1 }
  0xa9   :  { %v393_v47 = vmax.f32 %v391_v37, %v392_v39  ;;  %v665_v21 = vadd.f32 %v154_v8, %v153_v1  ;;  %v121_v12 = vrot.slane %v120_v9, 1  ;;  %v142_v14 = vrot.slane %v141_v10, 1 }
  0xaa   :  { %v667_v23 = vadd.f32 %v166_v11, %v165_v54  ;;  %v128_v26 = vrot.slane %v127_v18, 1  ;;  %v161_v19 = vrot.slane %v160_v20, 2  ;;  %v149_v29 = vrot.slane %v663_v45, 1 }
  0xab   :  { %v445_v52 = vsel %vm865_vm15, %v393_v47, %v444_v50  ;;  %v672_v31 = vadd.f32 %v135_v48, %v134_v7  ;;  %v156_v33 = vrot.slane %v665_v21, 1  ;;  %v677_v35 = vadd.f32 %v121_v12, %v120_v9 }
  0xac   :  { %v446_v57 = vsel %vm864_vm0, %v400_v43, %v445_v52  ;;  %v679_v13 = vadd.f32 %v142_v14, %v141_v10  ;;  %v168_v15 = vrot.slane %v667_v23, 2  ;;  %v682_v36 = vadd.f32 %v128_v26, %v127_v18 }
  0xad   :  { %447 = vrot.lane.b32.xlu0 %v446_v57, %s577_s0  ;;  %v687_v16 = vadd.f32 %v161_v19, %v160_v20 }
  0xbc   :  { %v175_v22 = vpop.xlane.xlu2 %174 }
  0xbd   :  { %v176_v25 = vmax.f32 %v175_v22, 1e-09 }
  0xbf   :  { %479 = vrcp.f32 %v176_v25  ;;  %v178_v24 = vrot.slane %v176_v25, 1  ;;  %v669_v28 = vrot.slane %v176_v25, 2  ;;  %v675_v34 = vrot.slane %v176_v25, 3 }
  0xc0   :  { %v684_v37 = vrot.slane %v176_v25, 4  ;;  %v204_v38 = vand.u32 2147483648, %v176_v25  ;;  %v690_v32 = vrot.slane %v176_v25, 5  ;;  %v692_v39 = vrot.slane %v176_v25, 6 }
  0xc1   :  { %481 = vrcp.f32 %v178_v24  ;;  %v217_v17 = vand.u32 2147483647, %v178_v24  ;;  %v219_v27 = vand.u32 2147483648, %v178_v24  ;;  %v232_v30 = vand.u32 2147483647, %v669_v28 }
  0xc2   :  { %483 = vrcp.f32 %v669_v28  ;;  %v694_v40 = vrot.slane %v176_v25, 7  ;;  %vm198_vm1 = vweird.f32 %v176_v25  ;;  %v202_v42 = vand.u32 2147483647, %v176_v25 }
  0xc3   :  { %485 = vrcp.f32 %v675_v34  ;;  %vm213_vm3 = vweird.f32 %v178_v24  ;;  %v234_v43 = vand.u32 2147483648, %v669_v28  ;;  %v701_v46 = vor.u32 1.1754944e-38, %v204_v38 }
  0xc4   :  { %vm228_vm4 = vweird.f32 %v669_v28  ;;  %487 = vrcp.f32 %v684_v37  ;;  %vm705_vm5 = vcmp.eq.f32.partialorder %v217_v17, 8.507059e+37  ;;  %v220_v50 = vor.u32 1.1754944e-38, %v219_v27 }
  0xc5   :  { %v697_v41 = vpop.eup %479  ;;  %vm709_vm6 = vcmp.eq.f32.partialorder %v232_v30, 8.507059e+37  ;;  %v247_v52 = vand.u32 2147483647, %v675_v34  ;;  %vm243_vm7 = vweird.f32 %v675_v34  ;;  %v249_v57 = vand.u32 2147483648, %v675_v34 }
  0xc6   :  { %v194_v44 = vmul.f32 %v697_v41, %v176_v25  ;;  %vm199_vm8 = vweird.f32 %v697_v41  ;;  %vm717_vm9 = vcmp.eq.f32.partialorder %v202_v42, 8.507059e+37  ;;  %v235_v61 = vor.u32 1.1754944e-38, %v234_v43 }
  0xc7   :  { %v482_v47 = vpop.eup %481  ;;  %489 = vrcp.f32 %v690_v32  ;;  %v262_v1 = vand.u32 2147483647, %v684_v37  ;;  %vm726_vm15 = vcmp.eq.f32.partialorder %v247_v52, 8.507059e+37  ;;  %vm736_vm14 = vmor %vm198_vm1, %vm199_vm8  ;;  %v250_v7 = vor.u32 1.1754944e-38, %v249_v57 }
  0xc8   :  { %v484_v53 = vpop.eup %483  ;;  %v195_v55 = vsub.f32 1.0, %v194_v44  ;;  %v209_v56 = vmul.f32 %v482_v47, %v178_v24  ;;  %vm214_vm2 = vweird.f32 %v482_v47  ;;  %491 = vrcp.f32 %v692_v39 }
  0xc9   :  { %v224_v59 = vmul.f32 %v484_v53, %v669_v28  ;;  %v486_v62 = vpop.eup %485  ;;  %vm229_vm0 = vweird.f32 %v484_v53  ;;  %vm742_vm13 = vmor %vm213_vm3, %vm214_vm2  ;;  %vm258_vm8 = vweird.f32 %v684_v37  ;;  %vm756_vm2 = vcmp.eq.f32.partialorder %v262_v1, 8.507059e+37 }
  0xca   :  { %v196_v63 = vmul.f32 %v697_v41, %v195_v55  ;;  %v210_v0 = vsub.f32 1.0, %v209_v56  ;;  %v239_v3 = vmul.f32 %v486_v62, %v675_v34  ;;  %v730_v5 = vpop.eup %487  ;;  %vm244_vm12 = vweird.f32 %v486_v62  ;;  %vm751_vm1 = vmor %vm228_vm4, %vm229_vm0 }
  0xcb   :  { %v225_v2 = vsub.f32 1.0, %v224_v59  ;;  %v254_v11 = vmul.f32 %v730_v5, %v684_v37  ;;  %v264_v22 = vand.u32 2147483648, %v684_v37  ;;  %vm273_vm3 = vweird.f32 %v690_v32  ;;  %vm769_vm0 = vmor %vm243_vm7, %vm244_vm12 }
  0xcc   :  { %v197_v54 = vadd.f32 %v697_v41, %v196_v63  ;;  %v211_v6 = vmul.f32 %v482_v47, %v210_v0  ;;  %v240_v10 = vsub.f32 1.0, %v239_v3  ;;  %vm259_vm4 = vweird.f32 %v730_v5 }
  0xcd   :  { %v226_v9 = vmul.f32 %v484_v53, %v225_v2  ;;  %v490_v12 = vpop.eup %489  ;;  %v255_v26 = vsub.f32 1.0, %v254_v11  ;;  %v277_v44 = vand.u32 2147483647, %v690_v32  ;;  %v279_v52 = vand.u32 2147483648, %v690_v32 }
  0xce   :  { %v212_v18 = vadd.f32 %v482_v47, %v211_v6  ;;  %v241_v25 = vmul.f32 %v486_v62, %v240_v10  ;;  %v201_v19 = vsel %vm736_vm14, %v697_v41, %v197_v54  ;;  %v269_v38 = vmul.f32 %v490_v12, %v690_v32  ;;  %v492_v42 = vpop.eup %491 }
  0xcf   :  { %v227_v14 = vadd.f32 %v484_v53, %v226_v9  ;;  %v256_v41 = vmul.f32 %v730_v5, %v255_v26  ;;  %vm274_vm12 = vweird.f32 %v490_v12  ;;  %v284_v51 = vmul.f32 %v492_v42, %v692_v39 }
  0xd0   :  { %v216_v24 = vsel %vm742_vm13, %v482_v47, %v212_v18  ;;  %v242_v30 = vadd.f32 %v486_v62, %v241_v25  ;;  %v270_v43 = vsub.f32 1.0, %v269_v38  ;;  %vm788_vm13 = vmor %vm258_vm8, %vm259_vm4  ;;  %v265_v56 = vor.u32 1.1754944e-38, %v264_v22 }
  0xd1   :  { %v221_v17 = vsel %vm705_vm5, %v220_v50, %v216_v24  ;;  %v231_v27 = vsel %vm751_vm1, %v484_v53, %v227_v14  ;;  %v257_v49 = vadd.f32 %v730_v5, %v256_v41  ;;  %v206_v53 = vsel %vm717_vm9, %v701_v46, %v201_v19  ;;  %vm803_vm14 = vmor %vm273_vm3, %vm274_vm12 }
  0xd2   :  { %v236_v34 = vsel %vm709_vm6, %v235_v61, %v231_v27  ;;  %v246_v47 = vsel %vm769_vm0, %v486_v62, %v242_v30  ;;  %v222_v55 = vmul.f32 %v221_v17, %v682_v36  ;;  %v271_v57 = vmul.f32 %v490_v12, %v270_v43 }
  0xd3   :  { %v237_v59 = vmul.f32 %v236_v34, %v672_v31  ;;  %v251_v37 = vsel %vm726_vm15, %v250_v7, %v246_v47  ;;  %v285_v62 = vsub.f32 1.0, %v284_v51  ;;  %vm288_vm5 = vweird.f32 %v692_v39 }
  0xd4   :  { %v261_v36 = vsel %vm788_vm13, %v730_v5, %v257_v49  ;;  %v272_v46 = vadd.f32 %v490_v12, %v271_v57  ;;  %vm289_vm6 = vweird.f32 %v492_v42  ;;  %493 = vrcp.f32 %v694_v40 }
  0xd5   :  { %vm812_vm7 = vcmp.eq.f32.partialorder %v277_v44, 8.507059e+37  ;;  %v280_v32 = vor.u32 1.1754944e-38, %v279_v52  ;;  %v286_v58 = vmul.f32 %v492_v42, %v285_v62  ;;  %v294_v63 = vand.u32 2147483648, %v692_v39  ;;  %vm826_vm15 = vmor %vm288_vm5, %vm289_vm6 }
  0xd6   :  { %v207_v0 = vmul.f32 %v206_v53, %v677_v35  ;;  %v276_v1 = vsel %vm803_vm14, %v490_v12, %v272_v46  ;;  %v292_v2 = vand.u32 2147483647, %v692_v39  ;;  %v409_v3 = vrot.slane %v222_v55, 7 }
  0xd7   :  { %v252_v4 = vmul.f32 %v251_v37, %v679_v13  ;;  %v266_v5 = vsel %vm756_vm2, %v265_v56, %v261_v36  ;;  %v287_v54 = vadd.f32 %v492_v42, %v286_v58  ;;  %v412_v6 = vrot.slane %v237_v59, 6 }
  0xd8   :  { %v150_v35 = vadd.f32 %v149_v29, %v663_v45  ;;  %v411_v7 = vsel %vm410_vm10, %v409_v3, %v207_v0  ;;  %v157_v13 = vadd.f32 %v156_v33, %v665_v21  ;;  %v281_v8 = vsel %vm812_vm7, %v280_v32, %v276_v1 }
  0xd9   :  { %v295_v9 = vor.u32 1.1754944e-38, %v294_v63  ;;  %v414_v39 = vsel %vm413_vm11, %v412_v6, %v411_v7  ;;  %v163_v11 = vrot.slane %v687_v16, 1  ;;  %v291_v20 = vsel %vm826_vm15, %v492_v42, %v287_v54 }
  0xda   :  { %v494_v10 = vpop.eup %493  ;;  %v267_v18 = vmul.f32 %v266_v5, %v150_v35  ;;  %vm293_vm9 = vcmp.eq.f32.partialorder %v292_v2, 8.507059e+37  ;;  %v169_v45 = vadd.f32 %v168_v15, %v667_v23  ;;  %v415_v29 = vrot.slane %v252_v4, 5 }
  0xdb   :  { %v299_v21 = vmul.f32 %v494_v10, %v694_v40  ;;  %v282_v33 = vmul.f32 %v281_v8, %v157_v13  ;;  %vm303_vm10 = vweird.f32 %v694_v40  ;;  %v307_v48 = vand.u32 2147483647, %v694_v40 }
  0xdc   :  { %v309_v22 = vand.u32 2147483648, %v694_v40  ;;  %v296_v12 = vsel %vm293_vm9, %v295_v9, %v291_v20  ;;  %vm304_vm11 = vweird.f32 %v494_v10  ;;  %vm895_vm1 = vcmask 1043459  }
  0xdd   :  { %v300_v14 = vsub.f32 1.0, %v299_v21  ;;  %v417_v25 = vsel %vm895_vm1, %v415_v29, %v414_v39  ;;  %v164_v26 = vadd.f32 %v163_v11, %v687_v16  ;;  %v418_v19 = vrot.slane %v267_v18, 4  ;;  %vm305_vm8 = vmor %vm303_vm10, %vm304_vm11 }
  0xde   :  { %v170_v24 = vrot.slane %v169_v45, 1  ;;  %v310_v28 = vor.u32 1.1754944e-38, %v309_v22  ;;  %vm896_vm2 = vcmask 1044484   ;;  %vm308_vm3 = vcmp.eq.f32.partialorder %v307_v48, 8.507059e+37 }
  0xdf   :  { %v301_v23 = vmul.f32 %v494_v10, %v300_v14  ;;  %v297_v15 = vmul.f32 %v296_v12, %v164_v26  ;;  %v420_v38 = vsel %vm896_vm2, %v418_v19, %v417_v25  ;;  %v421_v27 = vrot.slane %v282_v33, 3 }
  0xe0   :  { %v171_v30 = vadd.f32 %v170_v24, %v169_v45  ;;  %vm897_vm0 = vcmask 1045509   ;;  %vm898_vm4 = vcmask 1046534   ;;  %vm899_vm12 = vcmask 1047559  }
  0xe1   :  { %v302_v17 = vadd.f32 %v494_v10, %v301_v23  ;;  %v423_v41 = vsel %vm897_vm0, %v421_v27, %v420_v38  ;;  %v424_v34 = vrot.slane %v297_v15, 2  ;;  %vm900_vm13 = vcmask 261120  }
  0xe2   :  { %vm450_vm14 = vcmask 523520  }
  0xe3   :  { %v306_v40 = vsel %vm305_vm8, %v494_v10, %v302_v17  ;;  %v426_v16 = vsel %vm898_vm4, %v424_v34, %v423_v41 }
  0xe4   :  { %v311_v42 = vsel %vm308_vm3, %v310_v28, %v306_v40 }
  0xe5   :  { %v312_v43 = vmul.f32 %v311_v42, %v171_v30 }
  0xe7   :  { %v427_v44 = vrot.slane %v312_v43, 1 }
  0xe9   :  { %v429_v47 = vsel %vm899_vm12, %v427_v44, %v426_v16 }
  0xea   :  { %431 = vst.msk [vmem:[#allocation7] sm:$0xff] %vm900_vm13, %v429_v47 }
 0x11f   :  { %v448_v49 = vpop.permute.xlu0 %447 }
 0x120   :  { %451 = vst.msk [vmem:[#allocation7] sm:$0xff] %vm450_vm14, %v448_v49 }
 0x121   :  { %462 = dma.vmem_to_hbm [thread:$0]  %s458_s21, 128, %s460_s24, [#allocation4]  }
 0x122   :  { %571 = dma.done.wait [#allocation4], 128  }
 0x123   :  { %572 = vsyncadd [#allocation4], 4294967168 }
 0x124   :  { %467 = vsyncpa [#allocation3], 1 }
 0x125   :  { %468 = vsyncpa [#allocation6], 1 }
 0x126   :  { %469 = vsyncpa [#allocation4], 1 }

</bundles_post_ra>
